<compile_context>
chip_gen: v6e
topology: v6e:2x2x1
jax: 0.10.0
libtpu: 0.0.40
codegen_flags: <defaults>
</compile_context>

<pallas_src>
import jax
import jax.numpy as jnp
from jax.experimental import pallas as pl
from jax.experimental.pallas import tpu as pltpu


# --------------------------------------------------------------------------
# Kernel
# --------------------------------------------------------------------------
def policy_kernel(x_ref, w_ref, b_ref, o_ref):
    # x_ref : (TM, NIN)        f32 activation tile (real features only)
    # w_ref : (3, HP, HP)      bf16 weights, zero-padded, VMEM-resident
    # b_ref : (3, 1, HP)       f32 biases, zero-padded, VMEM-resident
    # o_ref : (TM, NOUT)       f32 action_mean tile (real outputs only)
    nin = x_ref.shape[1]
    nout = o_ref.shape[1]

    x = x_ref[...].astype(jnp.bfloat16)                       # (TM, NIN)

    # affine1 + tanh: only the first `nin` weight rows are real.
    h = jnp.dot(x, w_ref[0, :nin, :], preferred_element_type=jnp.float32)
    h = jnp.tanh(h + b_ref[0])                                 # (TM, HP) f32

    # affine2 + tanh
    h = jnp.dot(h.astype(jnp.bfloat16), w_ref[1],
                preferred_element_type=jnp.float32)
    h = jnp.tanh(h + b_ref[1])                                 # (TM, HP) f32

    # action_mean head (no activation); keep only the real output lanes.
    y = jnp.dot(h.astype(jnp.bfloat16), w_ref[2],
                preferred_element_type=jnp.float32) + b_ref[2]
    o_ref[...] = y[:, :nout].astype(o_ref.dtype)


# --------------------------------------------------------------------------
# Wrappers
# --------------------------------------------------------------------------
def _round_up(x, m):
    return ((x + m - 1) // m) * m


def pack_params(w1, b1, w2, b2, w3, b3, weight_dtype=jnp.bfloat16):
    """Pack weights/biases into zero-padded 128-lane slabs.

    w*: (in, out) layout, b*: (out,).
    Returns (weights (3, HP, HP) bf16, biases (3, 1, HP) f32).
    Zero padding is exact: padded activation lanes stay 0 through every layer.
    """
    nin, hidden = w1.shape
    nout = w3.shape[1]
    hp = 128 * pl.cdiv(max(nin, hidden, nout), 128)

    w = jnp.zeros((3, hp, hp), jnp.float32)
    w = w.at[0, :nin, :hidden].set(w1.astype(jnp.float32))
    w = w.at[1, :hidden, :hidden].set(w2.astype(jnp.float32))
    w = w.at[2, :hidden, :nout].set(w3.astype(jnp.float32))

    b = jnp.zeros((3, 1, hp), jnp.float32)
    b = b.at[0, 0, :hidden].set(b1.astype(jnp.float32))
    b = b.at[1, 0, :hidden].set(b2.astype(jnp.float32))
    b = b.at[2, 0, :nout].set(b3.astype(jnp.float32))

    return w.astype(weight_dtype), b


def policy_forward(x, weights, biases, action_log_std, num_outputs, *, tm=None):
    """Returns (action_mean, action_log_std) like Policy.forward."""
    B, nin = x.shape
    x = x.astype(jnp.float32)

    # Batch tile: multiple of 8 (f32 sublane). For moderate B pick TM ~ B/2 so
    # the "parallel" batch axis has >= 2 steps (v7x megacore split); cap at
    # 1024 rows (per-step VMEM ~< 0.2 MB here, far under every chip's limit).
    if tm is None:
        tm = min(1024, max(8, _round_up(pl.cdiv(B, 2), 8)))
    else:
        tm = max(8, _round_up(tm, 8))

    grid = pl.cdiv(_round_up(B, 8), tm)
    b_pad = grid * tm
    if b_pad == B:
        x_p = x
    else:
        x_p = jnp.zeros((b_pad, nin), jnp.float32).at[:B].set(x)

    out = pl.pallas_call(
        policy_kernel,
        out_shape=jax.ShapeDtypeStruct((b_pad, num_outputs), jnp.float32),
        grid_spec=pltpu.PrefetchScalarGridSpec(
            num_scalar_prefetch=0,
            grid=(grid,),
            in_specs=[
                pl.BlockSpec((tm, nin), lambda i: (i, 0)),        # activations
                pl.BlockSpec(weights.shape, lambda i: (0, 0, 0)),  # resident W
                pl.BlockSpec(biases.shape, lambda i: (0, 0, 0)),   # resident b
            ],
            out_specs=pl.BlockSpec((tm, num_outputs), lambda i: (i, 0)),
        ),
        compiler_params=pltpu.CompilerParams(
            dimension_semantics=("parallel",),   # megacore split on v7x
        ),
    )(x_p, weights, biases)

    action_mean = out[:B]
    log_std = jnp.broadcast_to(action_log_std, action_mean.shape)
    return action_mean, log_std


# --------------------------------------------------------------------------
# Init helpers (mimic torch.nn.init.orthogonal_ + default Linear bias init)
# --------------------------------------------------------------------------
def orthogonal(key, rows, cols, dtype=jnp.float32):
    n, m = max(rows, cols), min(rows, cols)
    a = jax.random.normal(key, (n, m), dtype=jnp.float32)
    q, r = jnp.linalg.qr(a)
    d = jnp.diagonal(r)
    q = q * jnp.where(d >= 0, 1.0, -1.0)      # robust sign fix (sign(0) pitfall)
    if rows < cols:
        q = q.T
    return q[:rows, :cols].astype(dtype)


def linear_bias(key, fan_in, out_features, dtype=jnp.float32):
    bound = 1.0 / jnp.sqrt(jnp.float32(fan_in))
    return jax.random.uniform(key, (out_features,), dtype=dtype,
                              minval=-bound, maxval=bound)


# --------------------------------------------------------------------------
# Self-test
# --------------------------------------------------------------------------
if __name__ == "__main__":
    num_inputs, num_outputs, hidden_size, batch = 16, 4, 32, 8

    key = jax.random.PRNGKey(0)
    kx, k1, k2, k3, kb1, kb2, kb3 = jax.random.split(key, 7)

    x = jax.random.normal(kx, (batch, num_inputs), dtype=jnp.float32)

    # torch weights are (out, in); stored transposed as (in, out) for the kernel.
    w1 = orthogonal(k1, hidden_size, num_inputs).T      # (num_inputs, hidden)
    w2 = orthogonal(k2, hidden_size, hidden_size).T     # (hidden, hidden)
    w3 = orthogonal(k3, num_outputs, hidden_size).T     # (hidden, num_outputs)
    b1 = linear_bias(kb1, num_inputs, hidden_size)      # (hidden,)
    b2 = linear_bias(kb2, hidden_size, hidden_size)     # (hidden,)
    b3 = linear_bias(kb3, hidden_size, num_outputs)     # (num_outputs,)
    action_log_std = jnp.zeros((1, num_outputs), jnp.float32)

    weights, biases = pack_params(w1, b1, w2, b2, w3, b3)

    mean, log_std = policy_forward(x, weights, biases, action_log_std,
                                   num_outputs)
    jax.block_until_ready((mean, log_std))

    # Pure-JAX f32 reference (same math as Policy.forward).
    hi = jax.lax.Precision.HIGHEST
    h = jnp.tanh(jnp.dot(x, w1, precision=hi) + b1[None, :])
    h = jnp.tanh(jnp.dot(h, w2, precision=hi) + b2[None, :])
    ref_mean = jnp.dot(h, w3, precision=hi) + b3[None, :]
    ref_log_std = jnp.broadcast_to(action_log_std, ref_mean.shape)

    assert mean.shape == (batch, num_outputs)
    assert log_std.shape == (batch, num_outputs)
    # bf16 MXU matmuls (f32 accumulation) vs f32 reference -> relaxed tolerance.
    max_err = float(jnp.max(jnp.abs(mean - ref_mean)))
    assert max_err < 5e-2, f"action_mean mismatch (max err {max_err})"
    assert jnp.allclose(log_std, ref_log_std), "action_log_std mismatch"

    # TODO(synk): Policy.act() (stochastic torch.normal sampling + log-prob) is
    # host/JAX-side logic, intentionally not lowered to Pallas.
    print("KERNEL_OK")
</pallas_src>

<mosaic_0001>
module attributes {stable_mosaic.version = 11 : i64} {
  func.func @policy_kernel(%arg0: i32, %arg1: memref<8x16xf32, #tpu.memory_space<vmem>>, %arg2: memref<3x128x128xbf16, #tpu.memory_space<vmem>>, %arg3: memref<3x1x128xf32, #tpu.memory_space<vmem>>, %arg4: memref<8x4xf32, #tpu.memory_space<vmem>>) attributes {dimension_semantics = [#tpu.dimension_semantics<parallel>], iteration_bounds = array<i64: 1>, scalar_prefetch = 0 : i64, scratch_operands = 0 : i64, tpu.core_type = #tpu.core_type<tc>, window_params = [{transform_indices = @transform_0, window_bounds = array<i64: 8, 16>}, {pipeline_mode = #tpu.pipeline_mode<synchronous>, transform_indices = @transform_1, window_bounds = array<i64: 3, 128, 128>}, {pipeline_mode = #tpu.pipeline_mode<synchronous>, transform_indices = @transform_2, window_bounds = array<i64: 3, 1, 128>}, {transform_indices = @transform_3, window_bounds = array<i64: 8, 4>}]} {
    %c0 = arith.constant 0 : index
    %c0_0 = arith.constant 0 : index
    %0 = vector.load %arg1[%c0, %c0_0] : memref<8x16xf32, #tpu.memory_space<vmem>>, vector<8x16xf32>
    %1 = arith.truncf %0 : vector<8x16xf32> to vector<8x16xbf16>
    %c0_1 = arith.constant 0 : index
    %c0_2 = arith.constant 0 : index
    %c0_3 = arith.constant 0 : index
    %2 = vector.load %arg2[%c0_1, %c0_2, %c0_3] : memref<3x128x128xbf16, #tpu.memory_space<vmem>>, vector<1x16x128xbf16>
    %3 = vector.shape_cast %2 : vector<1x16x128xbf16> to vector<16x128xbf16>
    %cst = arith.constant dense<0.000000e+00> : vector<8x128xf32>
    %4 = tpu.matmul %1, %3, %cst {dimension_numbers = #tpu.dot_dimension_numbers<[1], [0], [0], [1], [0, 0, 1, 1], [], []>} : vector<8x16xbf16>, vector<16x128xbf16>, vector<8x128xf32> -> vector<8x128xf32>
    %c0_4 = arith.constant 0 : index
    %c0_5 = arith.constant 0 : index
    %c0_6 = arith.constant 0 : index
    %5 = vector.load %arg3[%c0_4, %c0_5, %c0_6] : memref<3x1x128xf32, #tpu.memory_space<vmem>>, vector<1x1x128xf32>
    %6 = vector.shape_cast %5 : vector<1x1x128xf32> to vector<1x128xf32>
    %7 = vector.broadcast %6 : vector<1x128xf32> to vector<8x128xf32>
    %8 = arith.addf %4, %7 : vector<8x128xf32>
    %9 = math.tanh %8 : vector<8x128xf32>
    %10 = arith.truncf %9 : vector<8x128xf32> to vector<8x128xbf16>
    %c1 = arith.constant 1 : index
    %c0_7 = arith.constant 0 : index
    %c0_8 = arith.constant 0 : index
    %11 = vector.load %arg2[%c1, %c0_7, %c0_8] : memref<3x128x128xbf16, #tpu.memory_space<vmem>>, vector<1x128x128xbf16>
    %12 = vector.shape_cast %11 : vector<1x128x128xbf16> to vector<128x128xbf16>
    %cst_9 = arith.constant dense<0.000000e+00> : vector<8x128xf32>
    %13 = tpu.matmul %10, %12, %cst_9 {dimension_numbers = #tpu.dot_dimension_numbers<[1], [0], [0], [1], [0, 0, 1, 1], [], []>} : vector<8x128xbf16>, vector<128x128xbf16>, vector<8x128xf32> -> vector<8x128xf32>
    %c1_10 = arith.constant 1 : index
    %c0_11 = arith.constant 0 : index
    %c0_12 = arith.constant 0 : index
    %14 = vector.load %arg3[%c1_10, %c0_11, %c0_12] : memref<3x1x128xf32, #tpu.memory_space<vmem>>, vector<1x1x128xf32>
    %15 = vector.shape_cast %14 : vector<1x1x128xf32> to vector<1x128xf32>
    %16 = vector.broadcast %15 : vector<1x128xf32> to vector<8x128xf32>
    %17 = arith.addf %13, %16 : vector<8x128xf32>
    %18 = math.tanh %17 : vector<8x128xf32>
    %19 = arith.truncf %18 : vector<8x128xf32> to vector<8x128xbf16>
    %c2 = arith.constant 2 : index
    %c0_13 = arith.constant 0 : index
    %c0_14 = arith.constant 0 : index
    %20 = vector.load %arg2[%c2, %c0_13, %c0_14] : memref<3x128x128xbf16, #tpu.memory_space<vmem>>, vector<1x128x128xbf16>
    %21 = vector.shape_cast %20 : vector<1x128x128xbf16> to vector<128x128xbf16>
    %cst_15 = arith.constant dense<0.000000e+00> : vector<8x128xf32>
    %22 = tpu.matmul %19, %21, %cst_15 {dimension_numbers = #tpu.dot_dimension_numbers<[1], [0], [0], [1], [0, 0, 1, 1], [], []>} : vector<8x128xbf16>, vector<128x128xbf16>, vector<8x128xf32> -> vector<8x128xf32>
    %c2_16 = arith.constant 2 : index
    %c0_17 = arith.constant 0 : index
    %c0_18 = arith.constant 0 : index
    %23 = vector.load %arg3[%c2_16, %c0_17, %c0_18] : memref<3x1x128xf32, #tpu.memory_space<vmem>>, vector<1x1x128xf32>
    %24 = vector.shape_cast %23 : vector<1x1x128xf32> to vector<1x128xf32>
    %25 = vector.broadcast %24 : vector<1x128xf32> to vector<8x128xf32>
    %26 = arith.addf %22, %25 : vector<8x128xf32>
    %27 = vector.extract_strided_slice %26 {offsets = [0, 0], sizes = [8, 4], strides = [1, 1]} : vector<8x128xf32> to vector<8x4xf32>
    %c0_19 = arith.constant 0 : index
    %c0_20 = arith.constant 0 : index
    %28 = vector.load %arg4[%c0_19, %c0_20] : memref<8x4xf32, #tpu.memory_space<vmem>>, vector<8x4xf32>
    tpu.vector_store %arg4[%c0_19, %c0_20], %27 {strides = array<i32>} : memref<8x4xf32, #tpu.memory_space<vmem>>, vector<8x4xf32>,
    return
  }
  func.func @transform_0(%arg0: i32) -> (i32, i32) {
    %c0_i32 = arith.constant 0 : i32
    %c0_i32_0 = arith.constant 0 : i32
    return %arg0, %c0_i32 : i32, i32
  }
  func.func @transform_1(%arg0: i32) -> (i32, i32, i32) {
    %c0_i32 = arith.constant 0 : i32
    %c0_i32_0 = arith.constant 0 : i32
    %c0_i32_1 = arith.constant 0 : i32
    %c0_i32_2 = arith.constant 0 : i32
    return %c0_i32, %c0_i32_0, %c0_i32_1 : i32, i32, i32
  }
  func.func @transform_2(%arg0: i32) -> (i32, i32, i32) {
    %c0_i32 = arith.constant 0 : i32
    %c0_i32_0 = arith.constant 0 : i32
    %c0_i32_1 = arith.constant 0 : i32
    %c0_i32_2 = arith.constant 0 : i32
    return %c0_i32, %c0_i32_0, %c0_i32_1 : i32, i32, i32
  }
  func.func @transform_3(%arg0: i32) -> (i32, i32) {
    %c0_i32 = arith.constant 0 : i32
    %c0_i32_0 = arith.constant 0 : i32
    return %arg0, %c0_i32 : i32, i32
  }
}

</mosaic_0001>

<bundles_post_ra>
// kernel: tpu_custom_call.1
= control target key start
LH: loop header
LB: loop body
LE: loop exit
PB: predicated region body
PF: predicated region fallthrough
CT: control target
= control target key end

     0   :  { %8 = vsyncpa [#allocation3], 0  ;;  %s567_s0 = inlined_call_operand.hbm [shape: f32[8,16], index: 0, kind: input, shape index: {}]   ;;  %s568_s1 = inlined_call_operand.hbm [shape: bf16[3,128,128], index: 1, kind: input, shape index: {}]   ;;  %s569_s2 = inlined_call_operand.vmem [shape: f32[3,1,128], index: 2, kind: input, shape index: {}]   ;;  %s570_s3 = inlined_call_operand.vmem [shape: f32[8,4], index: 3, kind: output, shape index: {}]  }
   0x1   :  { %9 = vsyncpa [#allocation5], 0  ;;  %s500_s12 = smov [#allocation2]   ;;  %s501_s14 = smov [#allocation4]  }
   0x2   :  { %s16_s13 = sshll.u32 %s500_s12, 4  ;;  %s25_s15 = sshll.u32 %s501_s14, 4  ;;  %s17_s13 = int_to_ptr.vmem [resolvable:$true] %s16_s13  ;;  %s26_s15 = int_to_ptr.vmem [resolvable:$true] %s25_s15 }
   0x3   :  { %s464_s16 = scalar_lea.vmem %s17_s13, 128  ;;  %p469_p1 = scmp.lt.s32.totalorder %s17_s13, %s17_s13 }
   0x4   :  { %p465_p0 = scmp.ne.s32.totalorder %s17_s13, %s464_s16  ;;  %p470_p2 = scmp.lt.s32.totalorder %s464_s16, %s464_s16 }
   0x6   :  { %p471_p3 = por %p470_p2, %p469_p1 }
   0x8   :  { %p472_p4 = pnand %p471_p3, %p465_p0 }
   0xa   :  { %475 = shalt.err (!%p472_p4)
}
   0xb   :  { %19 = dma.hbm_to_vmem [thread:$0]  %s567_s0, 128, %s17_s13, [#allocation3]  }
   0xc   :  { %s484_s19 = scalar_lea.vmem %s26_s15, 3072  ;;  %p489_p6 = scmp.lt.s32.totalorder %s26_s15, %s26_s15 }
   0xd   :  { %p485_p5 = scmp.ne.s32.totalorder %s26_s15, %s484_s19  ;;  %p490_p7 = scmp.lt.s32.totalorder %s484_s19, %s484_s19 }
   0xf   :  { %p491_p8 = por %p490_p7, %p489_p6 }
  0x11   :  { %p492_p9 = pnand %p491_p8, %p485_p5 }
  0x13   :  { %495 = shalt.err (!%p492_p9)
}
  0x14   :  { %s502_s20 = smov 64   ;;  %s503_s21 = smov 4  }
  0x15   :  { %31 = dma.hbm_to_vmem [thread:$0]  %s568_s1, 3072, %s26_s15, [#allocation5], %s502_s20, %s502_s20, %s503_s21  }
  0x16   :  { %496 = dma.done.wait [#allocation3], 128  }
  0x17   :  { %497 = vsyncadd [#allocation3], 4294967168 }
  0x18   :  { %498 = dma.done.wait [#allocation5], 3072  }
  0x19   :  { %499 = vsyncadd [#allocation5], 4294964224  ;;  %v504_v0 = vmov 0.0   ;;  %vm505_vm0 = vmmov 0   ;;  %v435_v1 = vld [vmem:[#allocation4] sm:$0xff]   ;;  %v41_v2 = vld [vmem:[#allocation2] sm:$0xff] }
  0x1a   :  { %383 = vmatprep.subr.bf16.mxu0 %v504_v0  ;;  %385 = vmatprep.mubr.msk.bf16.mxu0 %vm505_vm0, %v504_v0  ;;  %v42_v3 = vpack.c.bf16 %v41_v2, %v41_v2  ;;  %vm58_vm1 = vcmask 130048   ;;  %v436_v4 = vld [vmem:[#allocation4 + $0x78] sm:$0xff]   ;;  %v437_v5 = vld [vmem:[#allocation4 + $0x70] sm:$0xff]   ;;  %v438_v6 = vld [vmem:[#allocation4 + $0x68] sm:$0xff]   ;;  %vm332_vm2 = vcmask 31744  }
  0x1b   :  { %389 = vmatprep.subr.bf16.mxu1 %v504_v0  ;;  %405 = vmatprep.mubr.msk.bf16.mxu1 %vm505_vm0, %v504_v0  ;;  %v439_v7 = vld [vmem:[#allocation4 + $0x60] sm:$0xff]   ;;  %v440_v8 = vld [vmem:[#allocation4 + $0x58] sm:$0xff]   ;;  %v441_v9 = vld [vmem:[#allocation4 + $0x50] sm:$0xff]  }
  0x1c   :  { %384 = vmatpush3.bf16.msra.mxu0 %v435_v1  ;;  %390 = vmatpush3.bf16.msra.mxu1 %v436_v4  ;;  %v442_v10 = vld [vmem:[#allocation4 + $0x48] sm:$0xff]   ;;  %v443_v11 = vld [vmem:[#allocation4 + $0x40] sm:$0xff]   ;;  %v444_v12 = vld [vmem:[#allocation4 + $0xb8] sm:$0xff]  }
  0x1d   :  { %409 = vmatprep.subr.bf16.mxu0 %v504_v0  ;;  %391 = vmatprep.subr.bf16.mxu1 %v504_v0  ;;  %v445_v13 = vld [vmem:[#allocation4 + $0xb0] sm:$0xff]   ;;  %v446_v14 = vld [vmem:[#allocation4 + $0xa8] sm:$0xff]   ;;  %v340_v15 = vld [vmem:[%s569_s2] ss:$0 sm:$0xff] }
  0x1e   :  { %v447_v23 = vld [vmem:[#allocation4 + $0xa0] sm:$0xff]   ;;  %v448_v24 = vld [vmem:[#allocation4 + $0x98] sm:$0xff]   ;;  %v449_v25 = vld [vmem:[#allocation4 + $0x90] sm:$0xff]  }
  0x1f   :  { %386 = vmatmul.mubr.msk.bf16.vlgmr.msra.gmra.mxu0 %vm58_vm1, %v42_v3  ;;  %v450_v26 = vld [vmem:[#allocation4 + $0x88] sm:$0xff]   ;;  %v451_v27 = vld [vmem:[#allocation4 + $0x80] sm:$0xff]   ;;  %v344_v28 = vld [vmem:[%s569_s2 + $0x1] ss:$0 sm:$0xff] }
  0x20   :  { %425 = vmatprep.mubr.msk.bf16.mxu0 %vm505_vm0, %v504_v0  ;;  %392 = vmatpush3.bf16.msra.mxu1 %v437_v5  ;;  %v354_v36 = vld [vmem:[%s569_s2 + $0x2] ss:$0 sm:$0xff] }
  0x21   :  { %393 = vmatprep.subr.bf16.mxu1 %v504_v0  ;;  %410 = vmatpush3.bf16.msra.mxu0 %v444_v12 }
  0x22   :  { %411 = vmatprep.subr.bf16.mxu0 %v504_v0 }
  0x24   :  { %394 = vmatpush3.bf16.msra.mxu1 %v438_v6 }
  0x25   :  { %395 = vmatprep.subr.bf16.mxu1 %v504_v0  ;;  %412 = vmatpush3.bf16.msra.mxu0 %v445_v13 }
  0x26   :  { %413 = vmatprep.subr.bf16.mxu0 %v504_v0 }
  0x28   :  { %396 = vmatpush3.bf16.msra.mxu1 %v439_v7 }
  0x29   :  { %397 = vmatprep.subr.bf16.mxu1 %v504_v0  ;;  %414 = vmatpush3.bf16.msra.mxu0 %v446_v14 }
  0x2a   :  { %415 = vmatprep.subr.bf16.mxu0 %v504_v0 }
  0x2c   :  { %398 = vmatpush3.bf16.msra.mxu1 %v440_v8 }
  0x2d   :  { %399 = vmatprep.subr.bf16.mxu1 %v504_v0  ;;  %416 = vmatpush3.bf16.msra.mxu0 %v447_v23 }
  0x2e   :  { %417 = vmatprep.subr.bf16.mxu0 %v504_v0 }
  0x30   :  { %400 = vmatpush3.bf16.msra.mxu1 %v441_v9 }
  0x31   :  { %401 = vmatprep.subr.bf16.mxu1 %v504_v0  ;;  %418 = vmatpush3.bf16.msra.mxu0 %v448_v24 }
  0x32   :  { %419 = vmatprep.subr.bf16.mxu0 %v504_v0 }
  0x34   :  { %402 = vmatpush3.bf16.msra.mxu1 %v442_v10 }
  0x35   :  { %403 = vmatprep.subr.bf16.mxu1 %v504_v0  ;;  %420 = vmatpush3.bf16.msra.mxu0 %v449_v25 }
  0x36   :  { %421 = vmatprep.subr.bf16.mxu0 %v504_v0 }
  0x38   :  { %404 = vmatpush3.bf16.msra.mxu1 %v443_v11 }
  0x39   :  { %422 = vmatpush3.bf16.msra.mxu0 %v450_v26 }
  0x3a   :  { %423 = vmatprep.subr.bf16.mxu0 %v504_v0 }
  0x3d   :  { %424 = vmatpush3.bf16.msra.mxu0 %v451_v27 }
  0xdf   :  { %v96_v16 = vpop.f32.mrf.mxu0 }
  0xe0   :  { %v97_v17 = vadd.f32 %v340_v15, %v96_v16 }
  0xe1   :  { %v387_v18 = vpop.f32.mrf.mxu0 }
  0xe2   :  { %452 = vtanh.f32 %v97_v17 }
  0xe3   :  { %v99_v19 = vpop.f32.mrf.mxu0 }
  0xe5   :  { %v388_v20 = vpop.f32.mrf.mxu0 }
  0xef   :  { %v453_v21 = vpop.eup %452 }
  0xf0   :  { %v103_v22 = vpack.c.bf16 %v453_v21, %v453_v21 }
  0xf2   :  { %406 = vmatmul.mubr.bf16.vlgmr.msra.gmra.mxu1 %v103_v22 }
 0x1b2   :  { %v211_v29 = vpop.f32.mrf.mxu1 }
 0x1b3   :  { %v212_v30 = vadd.f32 %v344_v28, %v211_v29 }
 0x1b4   :  { %v407_v31 = vpop.f32.mrf.mxu1 }
 0x1b5   :  { %454 = vtanh.f32 %v212_v30 }
 0x1b6   :  { %v214_v32 = vpop.f32.mrf.mxu1 }
 0x1b8   :  { %v408_v33 = vpop.f32.mrf.mxu1 }
 0x1c2   :  { %v455_v34 = vpop.eup %454 }
 0x1c3   :  { %v218_v35 = vpack.c.bf16 %v455_v34, %v455_v34 }
 0x1c5   :  { %426 = vmatmul.mubr.bf16.vlgmr.msra.gmra.mxu0 %v218_v35 }
 0x285   :  { %v326_v37 = vpop.f32.mrf.mxu0 }
 0x286   :  { %v327_v38 = vadd.f32 %v354_v36, %v326_v37 }
 0x287   :  { %v427_v39 = vpop.f32.mrf.mxu0 }
 0x288   :  { %333 = vst.msk [vmem:[%s570_s3] sm:$0xff] %vm332_vm2, %v327_v38 }
 0x289   :  { %v329_v40 = vpop.f32.mrf.mxu0 }
 0x28b   :  { %v428_v41 = vpop.f32.mrf.mxu0 }
 0x28c   :  { %338 = vsyncpa [#allocation3], 1 }
 0x28d   :  { %339 = vsyncpa [#allocation5], 1 }

</bundles_post_ra>
